<compile_context>
chip_gen: v7x
topology: tpu7x:2x2x1
jax: 0.10.0
libtpu: 0.0.40
codegen_flags: <defaults>
</compile_context>

<pallas_src>
import jax
import jax.numpy as jnp
from jax import lax
from jax.experimental import pallas as pl
from jax.experimental.pallas import tpu as pltpu
import numpy as np

BN_EPS = 1e-5
THP_CAP = 16                        # pooled output rows per grid step (cap)
VMEM_LIMIT = 32 * 1024 * 1024       # scoped-VMEM limit (v7x-safe, v5e default is 16 MiB)


# ---------------------------------------------------------------------------
# Fused Pallas kernel: conv(7x7/s2, BN folded) + ReLU + maxpool(3x3/s2/p1)
# ---------------------------------------------------------------------------
def _stem_kernel(p_ref, w_ref, b_ref, o_ref, carry_ref):
    """One block of pooled output rows of one image.

    p_ref:     (R*Wo, K) bf16   im2col rows for conv rows [2*hp0, 2*hp0 + R),
                                row order (conv_row, w_parity, wp)
    w_ref:     (K, C)    bf16   conv weight with BN scale folded in
    b_ref:     (1, C)    f32    folded BN bias
    o_ref:     (THP, Wp, C) f32 pooled rows [hp0, hp0 + THP)
    carry_ref: (1, Wp, C)   f32 W-pooled conv row (2*hp0 - 1) carried from the
                                previous (sequential) hb step of this image
    """
    THP, Wp, C = o_ref.shape
    R = 2 * THP

    # ---- conv + folded-BN bias + ReLU (f32 MXU accumulation) ----
    acc = jnp.dot(p_ref[...], w_ref[...], preferred_element_type=jnp.float32)
    y = jnp.maximum(acc + b_ref[...], 0.0)                     # (R*2*Wp, C)
    y = y.reshape(R, 2, Wp, C)                                 # (conv_row, w_parity, wp, C)

    # ---- pool along W: conv cols 2*wp-1, 2*wp, 2*wp+1 ----
    even_w = y[:, 0]                                           # cols 2*wp      -> (R, Wp, C)
    odd_w = y[:, 1]                                            # cols 2*wp + 1
    # cols 2*wp - 1 == odd col (wp - 1); wp == 0 hits the -inf pad.
    # XLU roll + mask instead of a 1-wide concatenate (avoids per-step copies).
    left_w = pltpu.roll(odd_w, shift=1, axis=1)
    wp_idx = lax.broadcasted_iota(jnp.int32, (R, Wp, C), 1)
    left_w = jnp.where(wp_idx == 0, -jnp.inf, left_w)
    wpool = jnp.maximum(jnp.maximum(even_w, odd_w), left_w)    # (R, Wp, C)

    # ---- pool along H: conv rows 2*hp-1, 2*hp, 2*hp+1 ----
    @pl.when(pl.program_id(1) == 0)
    def _init():
        # top -inf padding row (PyTorch MaxPool2d padding semantics)
        carry_ref[...] = jnp.full(carry_ref.shape, -jnp.inf, carry_ref.dtype)

    wpool = wpool.reshape(THP, 2, Wp, C)                       # leading split: layout no-op
    e_h = wpool[:, 0]                                          # conv rows 2*hp
    o_h = wpool[:, 1]                                          # conv rows 2*hp + 1
    if THP > 1:
        up_h = jnp.concatenate([carry_ref[...], o_h[:THP - 1]], axis=0)
    else:
        up_h = carry_ref[...]
    o_ref[...] = jnp.maximum(jnp.maximum(e_h, o_h), up_h).astype(o_ref.dtype)

    # carry the last W-pooled odd conv row for the next pooled-row block
    carry_ref[...] = o_h[THP - 1:THP]


# ---------------------------------------------------------------------------
# Wrapper
# ---------------------------------------------------------------------------
def _pick_thp(hp, cap=THP_CAP):
    # largest divisor of hp not exceeding cap; dividing exactly keeps the
    # sequential H-halo carry simple and means no padded pooled rows are ever
    # computed or written.
    for t in range(min(cap, hp), 0, -1):
        if hp % t == 0:
            return t
    return hp


def visible_module_forward(x_nchw, params):
    w_oihw = params["conv1_w"]                               # (64, 3, 7, 7)
    gamma, beta = params["bn1_gamma"], params["bn1_beta"]
    mean, var = params["bn1_mean"], params["bn1_var"]

    N, C, H, W = x_nchw.shape
    Cout, Cin, KH, KW = w_oihw.shape
    assert C == Cin
    stride, pad = 2, 3
    Ho = (H + 2 * pad - KH) // stride + 1
    Wo = (W + 2 * pad - KW) // stride + 1
    K = KH * KW * Cin

    # TODO(synk): odd conv-output sizes would need one extra -inf pad row/col in
    # the fused maxpool; standard stem inputs (H, W multiples of 4) are fine.
    assert Ho % 2 == 0 and Wo % 2 == 0, "fused conv+maxpool path expects even conv output"
    Hp, Wp = Ho // 2, Wo // 2
    # pad pooled width to a multiple of 8 so the in-kernel (rows, C) ->
    # (R, 2, Wp, C) row unflatten is a pure layout no-op for every input size
    Wp_pad = ((Wp + 7) // 8) * 8
    Wo_pad = 2 * Wp_pad

    # ---- im2col in bf16 (f32 MXU accumulation in the kernel) ----
    # TODO(synk): this slab is ~12x the raw input in HBM (XLA write + kernel
    # read); eliminating it requires manual-DMA assembly of overlapping input
    # row windows inside the kernel (BlockSpec cannot express the overlap).
    x = jnp.transpose(x_nchw, (0, 2, 3, 1)).astype(jnp.bfloat16)      # NHWC
    xp = jnp.pad(x, ((0, 0), (pad, pad), (pad, pad), (0, 0)))
    cols = []
    for kh in range(KH):
        for kw in range(KW):
            cols.append(xp[:, kh:kh + stride * Ho:stride,
                            kw:kw + stride * Wo:stride, :])
    patches = jnp.stack(cols, axis=3).reshape(N, Ho, Wo, K)
    if Wo_pad != Wo:
        patches = jnp.pad(patches, ((0, 0), (0, 0), (0, Wo_pad - Wo), (0, 0)))
    # row order (conv_row, w_parity, wp): lets the kernel split W parity with a
    # free axis split; the transpose is fused by XLA into the slab pass itself.
    patches = patches.reshape(N, Ho, Wp_pad, 2, K).transpose(0, 1, 3, 2, 4)
    patches = patches.reshape(N, Ho * Wo_pad, K)

    # ---- fold eval-mode BN: scale into the weights, bias added in the kernel ----
    inv_std = (gamma / jnp.sqrt(var + BN_EPS)).astype(jnp.float32)
    w_mat = jnp.transpose(w_oihw, (2, 3, 1, 0)).reshape(K, Cout).astype(jnp.float32)
    w_fold = (w_mat * inv_std[None, :]).astype(jnp.bfloat16)
    bias = (beta - mean * inv_std).reshape(1, Cout).astype(jnp.float32)

    THP = _pick_thp(Hp)
    R = 2 * THP

    out = pl.pallas_call(
        _stem_kernel,
        out_shape=jax.ShapeDtypeStruct((N, Hp, Wp_pad, Cout), jnp.float32),
        grid=(N, Hp // THP),
        in_specs=[
            pl.BlockSpec((None, R * Wo_pad, K), lambda n, hb: (n, hb, 0)),
            pl.BlockSpec((K, Cout), lambda n, hb: (0, 0)),
            pl.BlockSpec((1, Cout), lambda n, hb: (0, 0)),
        ],
        out_specs=pl.BlockSpec((None, THP, Wp_pad, Cout),
                               lambda n, hb: (n, hb, 0, 0)),
        scratch_shapes=[pltpu.VMEM((1, Wp_pad, Cout), jnp.float32)],
        compiler_params=pltpu.CompilerParams(
            # hb must stay "arbitrary": the 1-row H-halo is carried across steps.
            # TODO(synk): for N=1 on v7x (2 TCs) the halo could be re-read via a
            # second 1-row input block to make hb parallel as well.
            dimension_semantics=("parallel", "arbitrary"),
            vmem_limit_bytes=VMEM_LIMIT),
    )(patches, w_fold, bias)

    out = out[:, :, :Wp, :]
    # NHWC -> NCHW to match the PyTorch module's return layout
    # (skip this transpose if the downstream consumer accepts NHWC).
    return jnp.transpose(out, (0, 3, 1, 2))


# ---------------------------------------------------------------------------
# Pure-JAX reference (for correctness check)
# ---------------------------------------------------------------------------
def _reference(x_nchw, params):
    w = params["conv1_w"]
    gamma, beta = params["bn1_gamma"], params["bn1_beta"]
    mean, var = params["bn1_mean"], params["bn1_var"]
    ref = lax.conv_general_dilated(
        x_nchw, w, window_strides=(2, 2), padding=((3, 3), (3, 3)),
        dimension_numbers=("NCHW", "OIHW", "NCHW"))
    inv = gamma / jnp.sqrt(var + BN_EPS)
    ref = ref * inv[None, :, None, None] + (beta - mean * inv)[None, :, None, None]
    ref = jnp.maximum(ref, 0.0)
    ref = lax.reduce_window(
        ref, -jnp.inf, lax.max,
        window_dimensions=(1, 1, 3, 3), window_strides=(1, 1, 2, 2),
        padding=((0, 0), (0, 0), (1, 1), (1, 1)))
    return ref


if __name__ == "__main__":
    key = jax.random.PRNGKey(0)
    kx, k1, k2, k3, k4, k5 = jax.random.split(key, 6)

    # small but shape-consistent with the ResNet-50 stem (3 input channels)
    x = jax.random.normal(kx, (2, 3, 32, 32), jnp.float32)          # NCHW

    params = {
        "conv1_w": jax.random.normal(k1, (64, 3, 7, 7), jnp.float32) * 0.05,
        "bn1_gamma": jax.random.uniform(k2, (64,), jnp.float32, 0.5, 1.5),
        "bn1_beta": jax.random.normal(k3, (64,), jnp.float32) * 0.1,
        "bn1_mean": jax.random.normal(k4, (64,), jnp.float32) * 0.1,
        "bn1_var": jax.random.uniform(k5, (64,), jnp.float32, 0.5, 1.5),
    }

    fwd = jax.jit(visible_module_forward)
    out = jax.block_until_ready(fwd(x, params))
    ref = jax.block_until_ready(_reference(x, params))

    assert out.shape == (2, 64, 8, 8), out.shape
    # bf16 patches/weights with f32 accumulation: intentionally relaxed tolerance
    np.testing.assert_allclose(np.asarray(out), np.asarray(ref),
                               rtol=2e-2, atol=2e-2)
    print("KERNEL_OK")
</pallas_src>

<mosaic_0001>
module attributes {stable_mosaic.version = 11 : i64} {
  func.func @_stem_kernel(%arg0: i32, %arg1: i32, %arg2: memref<1x256x147xbf16, #tpu.memory_space<vmem>>, %arg3: memref<147x64xbf16, #tpu.memory_space<vmem>>, %arg4: memref<1x64xf32, #tpu.memory_space<vmem>>, %arg5: memref<1x8x8x64xf32, #tpu.memory_space<vmem>>, %arg6: memref<1x8x64xf32, #tpu.memory_space<vmem>>) attributes {dimension_semantics = [#tpu.dimension_semantics<parallel>, #tpu.dimension_semantics<arbitrary>], iteration_bounds = array<i64: 2, 1>, scalar_prefetch = 0 : i64, scratch_operands = 1 : i64, tpu.core_type = #tpu.core_type<tc>, window_params = [{transform_indices = @transform_0, window_bounds = array<i64: 1, 256, 147>}, {pipeline_mode = #tpu.pipeline_mode<synchronous>, transform_indices = @transform_1, window_bounds = array<i64: 147, 64>}, {pipeline_mode = #tpu.pipeline_mode<synchronous>, transform_indices = @transform_2, window_bounds = array<i64: 1, 64>}, {transform_indices = @transform_3, window_bounds = array<i64: 1, 8, 8, 64>}]} {
    %c0 = arith.constant 0 : index
    %c0_0 = arith.constant 0 : index
    %c0_1 = arith.constant 0 : index
    %0 = vector.load %arg2[%c0, %c0_0, %c0_1] : memref<1x256x147xbf16, #tpu.memory_space<vmem>>, vector<1x256x147xbf16>
    %1 = vector.shape_cast %0 : vector<1x256x147xbf16> to vector<256x147xbf16>
    %c0_2 = arith.constant 0 : index
    %c0_3 = arith.constant 0 : index
    %2 = vector.load %arg3[%c0_2, %c0_3] : memref<147x64xbf16, #tpu.memory_space<vmem>>, vector<147x64xbf16>
    %cst = arith.constant dense<0.000000e+00> : vector<256x64xf32>
    %3 = tpu.matmul %1, %2, %cst {dimension_numbers = #tpu.dot_dimension_numbers<[1], [0], [0], [1], [0, 0, 1, 1], [], []>} : vector<256x147xbf16>, vector<147x64xbf16>, vector<256x64xf32> -> vector<256x64xf32>
    %c0_4 = arith.constant 0 : index
    %c0_5 = arith.constant 0 : index
    %4 = vector.load %arg4[%c0_4, %c0_5] : memref<1x64xf32, #tpu.memory_space<vmem>>, vector<1x64xf32>
    %5 = vector.broadcast %4 : vector<1x64xf32> to vector<256x64xf32>
    %6 = arith.addf %3, %5 : vector<256x64xf32>
    %cst_6 = arith.constant 0.000000e+00 : f32
    %7 = vector.broadcast %cst_6 : f32 to vector<256x64xf32>
    %8 = arith.maximumf %6, %7 : vector<256x64xf32>
    %9 = vector.shape_cast %8 : vector<256x64xf32> to vector<16x2x8x64xf32>
    %10 = vector.extract_strided_slice %9 {offsets = [0, 0, 0, 0], sizes = [16, 1, 8, 64], strides = [1, 1, 1, 1]} : vector<16x2x8x64xf32> to vector<16x1x8x64xf32>
    %11 = vector.shape_cast %10 : vector<16x1x8x64xf32> to vector<16x8x64xf32>
    %12 = vector.extract_strided_slice %9 {offsets = [0, 1, 0, 0], sizes = [16, 1, 8, 64], strides = [1, 1, 1, 1]} : vector<16x2x8x64xf32> to vector<16x1x8x64xf32>
    %13 = vector.shape_cast %12 : vector<16x1x8x64xf32> to vector<16x8x64xf32>
    %c1_i32 = arith.constant 1 : i32
    %14 = tpu.dynamic_rotate %13 by %c1_i32 dim 1 : vector<16x8x64xf32>, i32 -> vector<16x8x64xf32>
    %15 = tpu.iota {dimensions = array<i32: 1>} : vector<16x8x64xi32>
    %c0_i32 = arith.constant 0 : i32
    %16 = vector.broadcast %c0_i32 : i32 to vector<16x8x64xi32>
    %17 = arith.cmpi eq, %15, %16 : vector<16x8x64xi32>
    %cst_7 = arith.constant 0xFF800000 : f32
    %18 = vector.broadcast %cst_7 : f32 to vector<16x8x64xf32>
    %19 = arith.select %17, %18, %14 : vector<16x8x64xi1>, vector<16x8x64xf32>
    %20 = arith.maximumf %11, %13 : vector<16x8x64xf32>
    %21 = arith.maximumf %20, %19 : vector<16x8x64xf32>
    %c0_i32_8 = arith.constant 0 : i32
    %22 = arith.cmpi eq, %arg1, %c0_i32_8 : i32
    %23 = arith.extui %22 : i1 to i32
    %c0_i32_9 = arith.constant 0 : i32
    %24 = arith.cmpi ne, %23, %c0_i32_9 : i32
    scf.if %24 {
      %cst_20 = arith.constant 0xFF800000 : f32
      %40 = vector.broadcast %cst_20 : f32 to vector<1x8x64xf32>
      %c0_21 = arith.constant 0 : index
      %c0_22 = arith.constant 0 : index
      %c0_23 = arith.constant 0 : index
      %41 = vector.load %arg6[%c0_21, %c0_22, %c0_23] : memref<1x8x64xf32, #tpu.memory_space<vmem>>, vector<1x8x64xf32>
      tpu.vector_store %arg6[%c0_21, %c0_22, %c0_23], %40 {strides = array<i32>} : memref<1x8x64xf32, #tpu.memory_space<vmem>>, vector<1x8x64xf32>,
    } else {
    }
    %25 = vector.shape_cast %21 : vector<16x8x64xf32> to vector<8x2x8x64xf32>
    %26 = vector.extract_strided_slice %25 {offsets = [0, 0, 0, 0], sizes = [8, 1, 8, 64], strides = [1, 1, 1, 1]} : vector<8x2x8x64xf32> to vector<8x1x8x64xf32>
    %27 = vector.shape_cast %26 : vector<8x1x8x64xf32> to vector<8x8x64xf32>
    %28 = vector.extract_strided_slice %25 {offsets = [0, 1, 0, 0], sizes = [8, 1, 8, 64], strides = [1, 1, 1, 1]} : vector<8x2x8x64xf32> to vector<8x1x8x64xf32>
    %29 = vector.shape_cast %28 : vector<8x1x8x64xf32> to vector<8x8x64xf32>
    %c0_10 = arith.constant 0 : index
    %c0_11 = arith.constant 0 : index
    %c0_12 = arith.constant 0 : index
    %30 = vector.load %arg6[%c0_10, %c0_11, %c0_12] : memref<1x8x64xf32, #tpu.memory_space<vmem>>, vector<1x8x64xf32>
    %31 = vector.extract_strided_slice %29 {offsets = [0, 0, 0], sizes = [7, 8, 64], strides = [1, 1, 1]} : vector<8x8x64xf32> to vector<7x8x64xf32>
    %32 = tpu.concatenate %30, %31 in 0 : vector<1x8x64xf32>, vector<7x8x64xf32> -> vector<8x8x64xf32>
    %33 = arith.maximumf %27, %29 : vector<8x8x64xf32>
    %34 = arith.maximumf %33, %32 : vector<8x8x64xf32>
    %c0_13 = arith.constant 0 : index
    %c0_14 = arith.constant 0 : index
    %c0_15 = arith.constant 0 : index
    %c0_16 = arith.constant 0 : index
    %35 = vector.load %arg5[%c0_13, %c0_14, %c0_15, %c0_16] : memref<1x8x8x64xf32, #tpu.memory_space<vmem>>, vector<1x8x8x64xf32>
    %36 = vector.shape_cast %35 : vector<1x8x8x64xf32> to vector<8x8x64xf32>
    %37 = vector.shape_cast %34 : vector<8x8x64xf32> to vector<1x8x8x64xf32>
    tpu.vector_store %arg5[%c0_13, %c0_14, %c0_15, %c0_16], %37 {strides = array<i32>} : memref<1x8x8x64xf32, #tpu.memory_space<vmem>>, vector<1x8x8x64xf32>,
    %38 = vector.extract_strided_slice %29 {offsets = [7, 0, 0], sizes = [1, 8, 64], strides = [1, 1, 1]} : vector<8x8x64xf32> to vector<1x8x64xf32>
    %c0_17 = arith.constant 0 : index
    %c0_18 = arith.constant 0 : index
    %c0_19 = arith.constant 0 : index
    %39 = vector.load %arg6[%c0_17, %c0_18, %c0_19] : memref<1x8x64xf32, #tpu.memory_space<vmem>>, vector<1x8x64xf32>
    tpu.vector_store %arg6[%c0_17, %c0_18, %c0_19], %38 {strides = array<i32>} : memref<1x8x64xf32, #tpu.memory_space<vmem>>, vector<1x8x64xf32>,
    return
  }
  func.func @transform_0(%arg0: i32, %arg1: i32) -> (i32, i32, i32) {
    %c0_i32 = arith.constant 0 : i32
    %c0_i32_0 = arith.constant 0 : i32
    return %arg0, %arg1, %c0_i32 : i32, i32, i32
  }
  func.func @transform_1(%arg0: i32, %arg1: i32) -> (i32, i32) {
    %c0_i32 = arith.constant 0 : i32
    %c0_i32_0 = arith.constant 0 : i32
    %c0_i32_1 = arith.constant 0 : i32
    return %c0_i32, %c0_i32_0 : i32, i32
  }
  func.func @transform_2(%arg0: i32, %arg1: i32) -> (i32, i32) {
    %c0_i32 = arith.constant 0 : i32
    %c0_i32_0 = arith.constant 0 : i32
    %c0_i32_1 = arith.constant 0 : i32
    return %c0_i32, %c0_i32_0 : i32, i32
  }
  func.func @transform_3(%arg0: i32, %arg1: i32) -> (i32, i32, i32, i32) {
    %c0_i32 = arith.constant 0 : i32
    %c0_i32_0 = arith.constant 0 : i32
    %c0_i32_1 = arith.constant 0 : i32
    return %arg0, %arg1, %c0_i32, %c0_i32_0 : i32, i32, i32, i32
  }
}

</mosaic_0001>

<bundles_post_ra>
// kernel: visible_module_forward.1
= control target key start
LH: loop header
LB: loop body
LE: loop exit
PB: predicated region body
PF: predicated region fallthrough
CT: control target
= control target key end

     0   :  { %8 = vsyncpa [#allocation4], 0  ;;  %s1539_s0 = inlined_call_operand.vmem [shape: bf16[2,256,147], index: 0, kind: input, shape index: {}]   ;;  %s1540_s1 = inlined_call_operand.vmem [shape: bf16[147,64], index: 1, kind: input, shape index: {}]   ;;  %s1541_s2 = inlined_call_operand.vmem [shape: f32[1,64], index: 2, kind: input, shape index: {}]   ;;  %s1542_s3 = inlined_call_operand.hbm [shape: f32[2,8,8,64], index: 3, kind: output, shape index: {}]  }
   0x1   :  { %10 = vsyncpa [#allocation4 + $0x1], 0  ;;  %s1228_s12 = smov 0   ;;  %s1230_s13 = smov 0  }
   0x2   :  { %s1232_s14 = smov 0   ;;  %s1234_s15 = smov 0  }
   0x3   :  { %s1236_s16 = smov 0   ;;  %s1238_s17 = smov 0  }
   0x4 LB: > { %s910_s18 = sadd.s32 4294967295, %s1200_s17   ;;  %s911_s19 = sadd.s32 4294967294, %s1200_s17   ;;  %s1200_s17 = sphi %s1238_s17, %s16_s17   ;;  %s1196_s16 = sphi %s1236_s16, %s1549_s16   ;;  %s1192_s15 = sphi %s1234_s15, %s1548_s15   ;;  %s1188_s14 = sphi %s1232_s14, %s1547_s14   ;;  %s1184_s13 = sphi %s1230_s13, %s1546_s13   ;;  %s1180_s12 = sphi %s1228_s12, %s1545_s12  }
   0x5   : > { %s28_s20 = sadd.s32 1, %s1196_s16  ;;  %s107_s21 = sadd.s32 1, %s1188_s14 }
   0x6   : > { %p30_p0 = scmp.ge.s32.totalorder %s28_s20, 2  ;;  %p117_p1 = scmp.ne.s32.totalorder %s1188_s14, %s1184_s13 }
   0x7   : > { %p118_p2 = scmp.eq.s32.totalorder %s910_s18, 1  ;;  %p123_p3 = scmp.ne.s32.totalorder %s1184_s13, %s1180_s12 }
   0x8   : > { %s1551_s20 = smov (%p30_p0, %s28_s20), 0  ;;  %p124_p5 = scmp.eq.s32.totalorder %s911_s19, 1 }
   0x9   : > { %p1268_p4 = por %p118_p2, %p117_p1  ;;  %s102_s23 = ssub.s32 %s1196_s16, %s1551_s20 }
   0xa   : > { %p914_p6 = scmp.ge.s32.totalorder %s1200_s17, 1  ;;  %p105_p7 = scmp.eq.s32.totalorder %s102_s23, 0 }
   0xb   : > { %p1275_p8 = por %p124_p5, %p123_p3  ;;  %p162_p9 = scmp.lt.s32.totalorder %s1200_s17, 3 }
   0xc   : > { %s1281_s25 = scalar_select %p105_p7, %s1188_s14, %s107_s21  }
   0xd   : > { %p163_p10 = pnand %p914_p6, %p162_p9 }
   0xe   : > { %v1064_v0 = vld [vmem:[%s1540_s1] sm:$0xff] (!%p163_p10)   ;;  %v1202_v1 = vmov (!%p163_p10), 0   ;;  %v1065_v2 = vld [vmem:[%s1540_s1 + $0x8] sm:$0xff] (!%p163_p10)   ;;  %v1066_v3 = vld [vmem:[%s1540_s1 + $0x10] sm:$0xff] (!%p163_p10)   ;;  %p192_p11 = scmp.lt.s32.totalorder (!%p163_p10), %s1192_s15, 1  ;;  %vm463_vm0 = vcmask (!%p163_p10), 154624   ;;  %v728_v49 = vlaneseq (!%p163_p10) }
   0xf   : > { %166 = sbr.rel (%p163_p10) target bundleno = 353 (0x161), region = 32  ;;  %519 = vmatprep.subr.bf16.mxu0 (!%p163_p10), %v1202_v1  ;;  %984 = vmatprep.subr.bf16.mxu1 (!%p163_p10), %v1202_v1  ;;  %v1067_v4 = vld [vmem:[%s1540_s1 + $0x18] sm:$0xff] (!%p163_p10)   ;;  %v1068_v6 = vld [vmem:[%s1540_s1 + $0x20] sm:$0xff] (!%p163_p10)   ;;  %v1069_v8 = vld [vmem:[%s1540_s1 + $0x28] sm:$0xff] (!%p163_p10)   ;;  %vm512_vm1 = vcmask (!%p163_p10), 1040384   ;;  %vm513_vm2 = vcmask (!%p163_p10), 1041408  }
  0x10   : > { %520 = vmatpush1.bf16.msra.mxu0 (!%p163_p10), %v1064_v0  ;;  %994 = vmatpush1.bf16.msra.mxu1 (!%p163_p10), %v1064_v0  ;;  %v1070_v9 = vld [vmem:[%s1540_s1 + $0x30] sm:$0xff] (!%p163_p10)   ;;  %v1071_v10 = vld [vmem:[%s1540_s1 + $0x38] sm:$0xff] (!%p163_p10)   ;;  %v1203_v11 = vmov (!%p163_p10), 65535   ;;  %v1072_v13 = vld [vmem:[%s1540_s1 + $0x40] sm:$0xff] (!%p163_p10)   ;;  %vm783_vm3 = vcmask (!%p163_p10), 523264   ;;  %v1204_v47 = vmov (!%p163_p10), -inf  }
  0x11   : > { %521 = vmatprep.subr.bf16.mxu0 (!%p163_p10), %v1202_v1  ;;  %985 = vmatprep.subr.bf16.mxu1 (!%p163_p10), %v1202_v1  ;;  %v514_v12 = vsel (!%p163_p10), %vm512_vm1, 4294967295, %v1203_v11  ;;  %v1073_v14 = vld [vmem:[%s1540_s1 + $0x48] ss:$0 sps:$4 sm:$0x33] (!%p163_p10)   ;;  %784 = vst.msk [vmem:[#allocation2] sm:$0xff] (!%p163_p10), %vm783_vm3, %v1204_v47  ;;  %v1376_v57 = vshrl.u32 (!%p163_p10), %v728_v49, 7 }
  0x12   : > { %v515_v15 = vsel (!%p163_p10), %vm513_vm2, %v514_v12, 0  ;;  %v1372_v48 = vld [vmem:[%s1541_s2] ss:$0 sm:$0xff] (!%p163_p10)  ;;  %s188_s9 = sand.u32 (!%p163_p10), 1, %s1184_s13   ;;  %s983_s18 = sshll.u32 (!%p163_p10), %s1192_s15, 10 }
  0x13   : > { %v517_v16 = vand.u32 (!%p163_p10), %v1073_v14, %v515_v15  ;;  %vm730_vm4 = vcmp.eq.s32.totalorder (!%p163_p10), %v1376_v57, 0  ;;  %s915_s10 = sshll.u32 (!%p163_p10), %s188_s9, 6  ;;  %s1481_s26 = scalar_lea.hbm (!%p163_p10), %s1542_s3, %s983_s18 }
  0x14   : > { %522 = vmatpush1.bf16.msra.mxu0 (!%p163_p10), %v1065_v2  ;;  %995 = vmatpush1.bf16.msra.mxu1 (!%p163_p10), %v1065_v2  ;;  %s1205_s28 = smov (!%p163_p10), [#allocation3]  }
  0x15   : > { %523 = vmatprep.subr.bf16.mxu0 (!%p163_p10), %v1202_v1  ;;  %986 = vmatprep.subr.bf16.mxu1 (!%p163_p10), %v1202_v1  ;;  %s1126_s29 = sshll.u32 (!%p163_p10), %s1205_s28, 4  ;;  %s1127_s29 = int_to_ptr.vmem [resolvable:$false] %s1126_s29 }
  0x16   : > { %s193_s5 = scalar_select %p192_p11, %s1192_s15, 1 }
  0x17   : > { %s1493_s15 = scalar_lea.sflag [#allocation4], %s188_s9  ;;  %s1128_s30 = scalar_lea.vmem %s1127_s29, 2048 }
  0x18   : > { %524 = vmatpush1.bf16.msra.mxu0 %v1066_v3  ;;  %996 = vmatpush1.bf16.msra.mxu1 %v1066_v3  ;;  %s982_s8 = sshll.u32 %s193_s5, 8 }
  0x19   : > { %525 = vmatprep.subr.bf16.mxu0 %v1202_v1  ;;  %987 = vmatprep.subr.bf16.mxu1 %v1202_v1  ;;  %s1300_s11 = scalar_lea.vmem %s1539_s0, %s982_s8 }
  0x1a   : > { %v1076_v5 = vld [vmem:[%s1300_s11 + $0x4] ss:$8 sps:$4 sm:$0xff]   ;;  %v1074_v17 = vld [vmem:[%s1300_s11] ss:$8 sps:$4 sm:$0xff]   ;;  %v1080_v19 = vld [vmem:[%s1300_s11 + $0x14] ss:$8 sps:$4 sm:$0xff]  }
  0x1b   : > { %v1079_v7 = vld [vmem:[%s1300_s11 + $0x84] ss:$8 sps:$4 sm:$0xff]   ;;  %961 = vmatprep.mubr.msk.bf16.mxu0 %vm463_vm0, %v1076_v5  ;;  %v1077_v18 = vld [vmem:[%s1300_s11 + $0x80] ss:$8 sps:$4 sm:$0xff]   ;;  %v1082_v20 = vld [vmem:[%s1300_s11 + $0x94] ss:$8 sps:$4 sm:$0xff]  }
  0x1c   : > { %526 = vmatpush1.bf16.msra.mxu0 %v1067_v4  ;;  %997 = vmatpush1.bf16.msra.mxu1 %v1067_v4  ;;  %v1084_v21 = vld [vmem:[%s1300_s11 + $0x10] ss:$8 sps:$4 sm:$0xff]   ;;  %v1086_v23 = vld [vmem:[%s1300_s11 + $0x24] ss:$8 sps:$4 sm:$0xff]   ;;  %v1090_v25 = vld [vmem:[%s1300_s11 + $0x20] ss:$8 sps:$4 sm:$0xff]  }
  0x1d   : > { %527 = vmatprep.subr.bf16.mxu0 %v1202_v1  ;;  %988 = vmatprep.subr.bf16.mxu1 %v1202_v1  ;;  %v1085_v22 = vld [vmem:[%s1300_s11 + $0x90] ss:$8 sps:$4 sm:$0xff]   ;;  %v1088_v24 = vld [vmem:[%s1300_s11 + $0xa4] ss:$8 sps:$4 sm:$0xff]   ;;  %v1091_v26 = vld [vmem:[%s1300_s11 + $0xa0] ss:$8 sps:$4 sm:$0xff]  }
  0x1e   : > { %969 = vmatprep.mubr.msk.bf16.mxu1 %vm463_vm0, %v1079_v7  ;;  %v1092_v27 = vld [vmem:[%s1300_s11 + $0x34] ss:$8 sps:$4 sm:$0xff]   ;;  %v1096_v29 = vld [vmem:[%s1300_s11 + $0x30] ss:$8 sps:$4 sm:$0xff]   ;;  %v1098_v31 = vld [vmem:[%s1300_s11 + $0x44] ss:$8 sps:$4 sm:$0xff]  }
  0x1f   : > { %v1094_v28 = vld [vmem:[%s1300_s11 + $0xb4] ss:$8 sps:$4 sm:$0xff]   ;;  %v1097_v30 = vld [vmem:[%s1300_s11 + $0xb0] ss:$8 sps:$4 sm:$0xff]   ;;  %v1100_v32 = vld [vmem:[%s1300_s11 + $0xc4] ss:$8 sps:$4 sm:$0xff]  }
  0x20   : > { %528 = vmatpush1.bf16.msra.mxu0 %v1068_v6  ;;  %998 = vmatpush1.bf16.msra.mxu1 %v1068_v6  ;;  %v1102_v33 = vld [vmem:[%s1300_s11 + $0x40] ss:$8 sps:$4 sm:$0xff]   ;;  %v1104_v35 = vld [vmem:[%s1300_s11 + $0x54] ss:$8 sps:$4 sm:$0xff]   ;;  %v1108_v37 = vld [vmem:[%s1300_s11 + $0x50] ss:$8 sps:$4 sm:$0xff]  }
  0x21   : > { %529 = vmatprep.subr.bf16.mxu0 %v1202_v1  ;;  %989 = vmatprep.subr.bf16.mxu1 %v1202_v1  ;;  %v1103_v34 = vld [vmem:[%s1300_s11 + $0xc0] ss:$8 sps:$4 sm:$0xff]   ;;  %v1106_v36 = vld [vmem:[%s1300_s11 + $0xd4] ss:$8 sps:$4 sm:$0xff]   ;;  %v1109_v38 = vld [vmem:[%s1300_s11 + $0xd0] ss:$8 sps:$4 sm:$0xff]  }
  0x22   : > { %v1110_v39 = vld [vmem:[%s1300_s11 + $0x64] ss:$8 sps:$4 sm:$0xff]   ;;  %v1114_v41 = vld [vmem:[%s1300_s11 + $0x60] ss:$8 sps:$4 sm:$0xff]   ;;  %v1116_v43 = vld [vmem:[%s1300_s11 + $0x74] ss:$8 sps:$4 sm:$0xff]  }
  0x23   : > { %v1112_v40 = vld [vmem:[%s1300_s11 + $0xe4] ss:$8 sps:$4 sm:$0xff]   ;;  %v1115_v42 = vld [vmem:[%s1300_s11 + $0xe0] ss:$8 sps:$4 sm:$0xff]   ;;  %v1118_v44 = vld [vmem:[%s1300_s11 + $0xf4] ss:$8 sps:$4 sm:$0xff]  }
  0x24   : > { %530 = vmatpush1.bf16.msra.mxu0 %v1069_v8  ;;  %999 = vmatpush1.bf16.msra.mxu1 %v1069_v8  ;;  %v1120_v45 = vld [vmem:[%s1300_s11 + $0x70] ss:$8 sps:$4 sm:$0xff]  }
  0x25   : > { %531 = vmatprep.subr.bf16.mxu0 %v1202_v1  ;;  %990 = vmatprep.subr.bf16.mxu1 %v1202_v1  ;;  %v1121_v46 = vld [vmem:[%s1300_s11 + $0xf0] ss:$8 sps:$4 sm:$0xff]   ;;  %s1408_s11 = scalar_lea.vmem [#allocation3], %s915_s10 }
  0x26   : > { %s828_s19 = sshll.u32 %s1408_s11, 4  ;;  %s1483_s19 = int_to_ptr.vmem [resolvable:$true] %s828_s19 }
  0x27   : > { %s1122_s27 = scalar_lea.vmem %s1483_s19, 1024  ;;  %p1129_p1 = scmp.lt.s32.totalorder %s1483_s19, %s1127_s29 }
  0x28   : > { %532 = vmatpush1.bf16.msra.mxu0 %v1070_v9  ;;  %1000 = vmatpush1.bf16.msra.mxu1 %v1070_v9  ;;  %p1123_p12 = scmp.ne.s32.totalorder %s1483_s19, %s1122_s27  ;;  %p1130_p2 = scmp.lt.s32.totalorder %s1128_s30, %s1122_s27 }
  0x29   : > { %533 = vmatprep.subr.bf16.mxu0 %v1202_v1  ;;  %991 = vmatprep.subr.bf16.mxu1 %v1202_v1 }
  0x2a   : > { %p1124_p13 = pnand %p1123_p12, %p1268_p4  ;;  %p1131_p3 = por %p1130_p2, %p1129_p1 }
  0x2c   : > { %534 = vmatpush1.bf16.msra.mxu0 %v1071_v10  ;;  %1001 = vmatpush1.bf16.msra.mxu1 %v1071_v10  ;;  %p1125_p0 = pneg %p1124_p13 }
  0x2d   : > { %535 = vmatprep.subr.bf16.mxu0 %v1202_v1  ;;  %992 = vmatprep.subr.bf16.mxu1 %v1202_v1 }
  0x2e   : > { %p1132_p5 = pnand %p1131_p3, %p1125_p0 }
  0x30   : > { %536 = vmatpush1.bf16.msra.mxu0 %v1072_v13  ;;  %1002 = vmatpush1.bf16.msra.mxu1 %v1072_v13 }
  0x31   : > { %537 = vmatprep.subr.bf16.mxu0 %v1202_v1  ;;  %993 = vmatprep.subr.bf16.mxu1 %v1202_v1 }
  0x34   : > { %538 = vmatpush1.bf16.msra.mxu0 %v517_v16  ;;  %1003 = vmatpush1.bf16.msra.mxu1 %v517_v16 }
  0x37   : > { %552 = vmatmul.mubr.bf16.vlgmr.msra.gmra.mrb[0].mxu0 %v1074_v17  ;;  %616 = vmatmul.mubr.bf16.vlgmr.msra.gmra.mrb[0].mxu1 %v1077_v18 }
  0x38   : > { %962 = vmatprep.mubr.msk.bf16.mxu0 %vm463_vm0, %v1080_v19  ;;  %970 = vmatprep.mubr.msk.bf16.mxu1 %vm463_vm0, %v1082_v20 }
  0x3f   : > { %560 = vmatmul.mubr.bf16.gmra.mrb[4].mxu0 %v1084_v21  ;;  %624 = vmatmul.mubr.bf16.gmra.mrb[4].mxu1 %v1085_v22 }
  0x40   : > { %963 = vmatprep.mubr.msk.bf16.mxu0 %vm463_vm0, %v1086_v23  ;;  %971 = vmatprep.mubr.msk.bf16.mxu1 %vm463_vm0, %v1088_v24 }
  0x47   : > { %568 = vmatmul.mubr.bf16.gmra.mrb[8].mxu0 %v1090_v25  ;;  %632 = vmatmul.mubr.bf16.gmra.mrb[8].mxu1 %v1091_v26 }
  0x48   : > { %964 = vmatprep.mubr.msk.bf16.mxu0 %vm463_vm0, %v1092_v27  ;;  %972 = vmatprep.mubr.msk.bf16.mxu1 %vm463_vm0, %v1094_v28 }
  0x4f   : > { %576 = vmatmul.mubr.bf16.gmra.mrb[12].mxu0 %v1096_v29  ;;  %640 = vmatmul.mubr.bf16.gmra.mrb[12].mxu1 %v1097_v30 }
  0x50   : > { %965 = vmatprep.mubr.msk.bf16.mxu0 %vm463_vm0, %v1098_v31  ;;  %973 = vmatprep.mubr.msk.bf16.mxu1 %vm463_vm0, %v1100_v32 }
  0x57   : > { %584 = vmatmul.mubr.bf16.gmra.mrb[16].mxu0 %v1102_v33  ;;  %648 = vmatmul.mubr.bf16.gmra.mrb[16].mxu1 %v1103_v34 }
  0x58   : > { %966 = vmatprep.mubr.msk.bf16.mxu0 %vm463_vm0, %v1104_v35  ;;  %974 = vmatprep.mubr.msk.bf16.mxu1 %vm463_vm0, %v1106_v36 }
  0x5f   : > { %592 = vmatmul.mubr.bf16.gmra.mrb[20].mxu0 %v1108_v37  ;;  %656 = vmatmul.mubr.bf16.gmra.mrb[20].mxu1 %v1109_v38 }
  0x60   : > { %967 = vmatprep.mubr.msk.bf16.mxu0 %vm463_vm0, %v1110_v39  ;;  %975 = vmatprep.mubr.msk.bf16.mxu1 %vm463_vm0, %v1112_v40 }
  0x67   : > { %600 = vmatmul.mubr.bf16.gmra.mrb[24].mxu0 %v1114_v41  ;;  %664 = vmatmul.mubr.bf16.gmra.mrb[24].mxu1 %v1115_v42 }
  0x68   : > { %968 = vmatprep.mubr.msk.bf16.mxu0 %vm463_vm0, %v1116_v43  ;;  %976 = vmatprep.mubr.msk.bf16.mxu1 %vm463_vm0, %v1118_v44  ;;  %v785_v43 = vld [vmem:[#allocation2] sm:$0xff] }
  0x6f   : > { %608 = vmatmul.mubr.bf16.gmra.mrb[28].mxu0 %v1120_v45  ;;  %672 = vmatmul.mubr.bf16.gmra.mrb[28].mxu1 %v1121_v46 }
 0x10a   : > { %v553_v50 = vpop.f32.mrb[0].mxu0  ;;  %v617_v51 = vpop.f32.mrb[0].mxu1 }
 0x10b   : > { %v554_v52 = vadd.f32 %v1372_v48, %v553_v50  ;;  %v618_v53 = vadd.f32 %v1372_v48, %v617_v51  ;;  %v555_v54 = vpop.f32.mrb[1].mxu0  ;;  %v619_v55 = vpop.f32.mrb[1].mxu1 }
 0x10c   : > { %v556_v56 = vpop.f32.mrb[2].mxu0  ;;  %v620_v58 = vpop.f32.mrb[2].mxu1 }
 0x10d   : > { %v557_v59 = vadd.f32 %v1372_v48, %v556_v56  ;;  %v621_v60 = vadd.f32 %v1372_v48, %v620_v58  ;;  %v558_v61 = vpop.f32.mrb[3].mxu0  ;;  %v622_v62 = vpop.f32.mrb[3].mxu1  ;;  %v680_v63 = vmax.f32 %v554_v52, 0.0  ;;  %v696_v0 = vmax.f32 %v618_v53, 0.0 }
 0x10f   : > { %v681_v1 = vmax.f32 %v557_v59, 0.0  ;;  %v697_v2 = vmax.f32 %v621_v60, 0.0 }
 0x111   : > { %v712_v3 = vrot.slane %v681_v1, 7  ;;  %v747_v4 = vmax.f32 %v680_v63, %v681_v1  ;;  %v720_v5 = vrot.slane %v697_v2, 7  ;;  %v755_v6 = vmax.f32 %v696_v0, %v697_v2 }
 0x112   : > { %v561_v7 = vpop.f32.mrb[4].mxu0  ;;  %v625_v8 = vpop.f32.mrb[4].mxu1 }
 0x113   : > { %v731_v9 = vsel %vm730_vm4, -inf, %v712_v3  ;;  %v739_v10 = vsel %vm730_vm4, -inf, %v720_v5  ;;  %v562_v11 = vadd.f32 %v1372_v48, %v561_v7  ;;  %v626_v12 = vadd.f32 %v1372_v48, %v625_v8  ;;  %v563_v13 = vpop.f32.mrb[5].mxu0  ;;  %v627_v14 = vpop.f32.mrb[5].mxu1 }
 0x114   : > { %v763_v15 = vmax.f32 %v747_v4, %v731_v9  ;;  %v771_v16 = vmax.f32 %v755_v6, %v739_v10  ;;  %v564_v17 = vpop.f32.mrb[6].mxu0  ;;  %v628_v18 = vpop.f32.mrb[6].mxu1 }
 0x115   : > { %v565_v19 = vadd.f32 %v1372_v48, %v564_v17  ;;  %v629_v20 = vadd.f32 %v1372_v48, %v628_v18  ;;  %v566_v21 = vpop.f32.mrb[7].mxu0  ;;  %v630_v22 = vpop.f32.mrb[7].mxu1  ;;  %v682_v23 = vmax.f32 %v562_v11, 0.0  ;;  %v698_v24 = vmax.f32 %v626_v12, 0.0 }
 0x117   : > { %v683_v25 = vmax.f32 %v565_v19, 0.0  ;;  %v699_v26 = vmax.f32 %v629_v20, 0.0 }
 0x119   : > { %v713_v27 = vrot.slane %v683_v25, 7  ;;  %v748_v28 = vmax.f32 %v682_v23, %v683_v25  ;;  %v721_v29 = vrot.slane %v699_v26, 7  ;;  %v756_v30 = vmax.f32 %v698_v24, %v699_v26 }
 0x11a   : > { %v569_v31 = vpop.f32.mrb[8].mxu0  ;;  %v633_v32 = vpop.f32.mrb[8].mxu1 }
 0x11b   : > { %v732_v33 = vsel %vm730_vm4, -inf, %v713_v27  ;;  %v740_v34 = vsel %vm730_vm4, -inf, %v721_v29  ;;  %v570_v35 = vadd.f32 %v1372_v48, %v569_v31  ;;  %v634_v36 = vadd.f32 %v1372_v48, %v633_v32  ;;  %v571_v37 = vpop.f32.mrb[9].mxu0  ;;  %v635_v38 = vpop.f32.mrb[9].mxu1 }
 0x11c   : > { %v1398_v39 = vmax.f32 %v748_v28, %v732_v33  ;;  %v1400_v40 = vmax.f32 %v756_v30, %v740_v34  ;;  %v572_v41 = vpop.f32.mrb[10].mxu0  ;;  %v636_v42 = vpop.f32.mrb[10].mxu1 }
 0x11d   : > { %v573_v44 = vadd.f32 %v1372_v48, %v572_v41  ;;  %v637_v45 = vadd.f32 %v1372_v48, %v636_v42  ;;  %v574_v46 = vpop.f32.mrb[11].mxu0  ;;  %v638_v47 = vpop.f32.mrb[11].mxu1  ;;  %v684_v51 = vmax.f32 %v570_v35, 0.0  ;;  %v700_v52 = vmax.f32 %v634_v36, 0.0 }
 0x11e   : > { %v786_v49 = vmax.f32 %v763_v15, %v1398_v39  ;;  %v1406_v50 = vmax.f32 %v771_v16, %v1400_v40 }
 0x11f   : > { %v685_v53 = vmax.f32 %v573_v44, 0.0  ;;  %v701_v54 = vmax.f32 %v637_v45, 0.0 }
 0x120   : > { %v794_v55 = vmax.f32 %v786_v49, %v785_v43 }
 0x121   : > { %v714_v56 = vrot.slane %v685_v53, 7  ;;  %v749_v58 = vmax.f32 %v684_v51, %v685_v53  ;;  %v722_v59 = vrot.slane %v701_v54, 7  ;;  %v757_v60 = vmax.f32 %v700_v52, %v701_v54 }
 0x122   : > { %803 = vst.msk [vmem:[%s1408_s11] sm:$0xff] %vm783_vm3, %v794_v55  ;;  %v577_v61 = vpop.f32.mrb[12].mxu0  ;;  %v641_v62 = vpop.f32.mrb[12].mxu1 }
 0x123   : > { %v733_v63 = vsel %vm730_vm4, -inf, %v714_v56  ;;  %v741_v0 = vsel %vm730_vm4, -inf, %v722_v59  ;;  %v578_v1 = vadd.f32 %v1372_v48, %v577_v61  ;;  %v642_v2 = vadd.f32 %v1372_v48, %v641_v62  ;;  %v579_v3 = vpop.f32.mrb[13].mxu0  ;;  %v643_v4 = vpop.f32.mrb[13].mxu1 }
 0x124   : > { %v765_v5 = vmax.f32 %v749_v58, %v733_v63  ;;  %v773_v6 = vmax.f32 %v757_v60, %v741_v0  ;;  %v580_v7 = vpop.f32.mrb[14].mxu0  ;;  %v644_v8 = vpop.f32.mrb[14].mxu1 }
 0x125   : > { %v581_v9 = vadd.f32 %v1372_v48, %v580_v7  ;;  %v645_v10 = vadd.f32 %v1372_v48, %v644_v8  ;;  %v582_v11 = vpop.f32.mrb[15].mxu0  ;;  %v646_v12 = vpop.f32.mrb[15].mxu1  ;;  %v686_v13 = vmax.f32 %v578_v1, 0.0  ;;  %v702_v14 = vmax.f32 %v642_v2, 0.0 }
 0x127   : > { %v687_v15 = vmax.f32 %v581_v9, 0.0  ;;  %v703_v16 = vmax.f32 %v645_v10, 0.0 }
 0x129   : > { %v715_v17 = vrot.slane %v687_v15, 7  ;;  %v750_v18 = vmax.f32 %v686_v13, %v687_v15  ;;  %v723_v19 = vrot.slane %v703_v16, 7  ;;  %v758_v20 = vmax.f32 %v702_v14, %v703_v16 }
 0x12a   : > { %v585_v21 = vpop.f32.mrb[16].mxu0  ;;  %v649_v22 = vpop.f32.mrb[16].mxu1 }
 0x12b   : > { %v734_v23 = vsel %vm730_vm4, -inf, %v715_v17  ;;  %v742_v24 = vsel %vm730_vm4, -inf, %v723_v19  ;;  %v586_v25 = vadd.f32 %v1372_v48, %v585_v21  ;;  %v650_v26 = vadd.f32 %v1372_v48, %v649_v22  ;;  %v587_v27 = vpop.f32.mrb[17].mxu0  ;;  %v651_v28 = vpop.f32.mrb[17].mxu1 }
 0x12c   : > { %v1426_v29 = vmax.f32 %v750_v18, %v734_v23  ;;  %v1428_v30 = vmax.f32 %v758_v20, %v742_v24  ;;  %v588_v31 = vpop.f32.mrb[18].mxu0  ;;  %v652_v32 = vpop.f32.mrb[18].mxu1 }
 0x12d   : > { %v589_v33 = vadd.f32 %v1372_v48, %v588_v31  ;;  %v653_v34 = vadd.f32 %v1372_v48, %v652_v32  ;;  %v590_v35 = vpop.f32.mrb[19].mxu0  ;;  %v654_v36 = vpop.f32.mrb[19].mxu1  ;;  %v688_v41 = vmax.f32 %v586_v25, 0.0  ;;  %v704_v42 = vmax.f32 %v650_v26, 0.0 }
 0x12e   : > { %v787_v37 = vmax.f32 %v765_v5, %v1426_v29  ;;  %v791_v38 = vmax.f32 %v773_v6, %v1428_v30 }
 0x12f   : > { %v689_v43 = vmax.f32 %v589_v33, 0.0  ;;  %v705_v44 = vmax.f32 %v653_v34, 0.0 }
 0x130   : > { %v795_v45 = vmax.f32 %v787_v37, %v1398_v39  ;;  %v799_v46 = vmax.f32 %v791_v38, %v1400_v40 }
 0x131   : > { %v716_v47 = vrot.slane %v689_v43, 7  ;;  %v751_v49 = vmax.f32 %v688_v41, %v689_v43  ;;  %v724_v51 = vrot.slane %v705_v44, 7  ;;  %v759_v52 = vmax.f32 %v704_v42, %v705_v44 }
 0x132   : > { %804 = vst.msk [vmem:[%s1408_s11 + $0x8] sm:$0xff] %vm783_vm3, %v795_v45  ;;  %808 = vst.msk [vmem:[%s1408_s11 + $0x28] sm:$0xff] %vm783_vm3, %v799_v46  ;;  %v593_v53 = vpop.f32.mrb[20].mxu0  ;;  %v657_v54 = vpop.f32.mrb[20].mxu1 }
 0x133   : > { %v735_v55 = vsel %vm730_vm4, -inf, %v716_v47  ;;  %v743_v56 = vsel %vm730_vm4, -inf, %v724_v51  ;;  %v594_v39 = vadd.f32 %v1372_v48, %v593_v53  ;;  %v658_v40 = vadd.f32 %v1372_v48, %v657_v54  ;;  %v595_v58 = vpop.f32.mrb[21].mxu0  ;;  %v659_v59 = vpop.f32.mrb[21].mxu1 }
 0x134   : > { %v767_v60 = vmax.f32 %v751_v49, %v735_v55  ;;  %v775_v61 = vmax.f32 %v759_v52, %v743_v56  ;;  %v596_v62 = vpop.f32.mrb[22].mxu0  ;;  %v660_v63 = vpop.f32.mrb[22].mxu1 }
 0x135   : > { %v597_v0 = vadd.f32 %v1372_v48, %v596_v62  ;;  %v661_v1 = vadd.f32 %v1372_v48, %v660_v63  ;;  %v598_v2 = vpop.f32.mrb[23].mxu0  ;;  %v662_v3 = vpop.f32.mrb[23].mxu1  ;;  %v690_v4 = vmax.f32 %v594_v39, 0.0  ;;  %v706_v5 = vmax.f32 %v658_v40, 0.0 }
 0x137   : > { %v691_v6 = vmax.f32 %v597_v0, 0.0  ;;  %v707_v7 = vmax.f32 %v661_v1, 0.0 }
 0x139   : > { %v717_v8 = vrot.slane %v691_v6, 7  ;;  %v752_v9 = vmax.f32 %v690_v4, %v691_v6  ;;  %v725_v10 = vrot.slane %v707_v7, 7  ;;  %v760_v11 = vmax.f32 %v706_v5, %v707_v7 }
 0x13a   : > { %v601_v12 = vpop.f32.mrb[24].mxu0  ;;  %v665_v13 = vpop.f32.mrb[24].mxu1 }
 0x13b   : > { %v736_v14 = vsel %vm730_vm4, -inf, %v717_v8  ;;  %v744_v15 = vsel %vm730_vm4, -inf, %v725_v10  ;;  %v602_v16 = vadd.f32 %v1372_v48, %v601_v12  ;;  %v666_v17 = vadd.f32 %v1372_v48, %v665_v13  ;;  %v603_v18 = vpop.f32.mrb[25].mxu0  ;;  %v667_v19 = vpop.f32.mrb[25].mxu1 }
 0x13c   : > { %v768_v20 = vmax.f32 %v752_v9, %v736_v14  ;;  %v776_v21 = vmax.f32 %v760_v11, %v744_v15  ;;  %v604_v22 = vpop.f32.mrb[26].mxu0  ;;  %v668_v23 = vpop.f32.mrb[26].mxu1 }
 0x13d   : > { %v605_v24 = vadd.f32 %v1372_v48, %v604_v22  ;;  %v669_v25 = vadd.f32 %v1372_v48, %v668_v23  ;;  %v606_v26 = vpop.f32.mrb[27].mxu0  ;;  %v670_v27 = vpop.f32.mrb[27].mxu1  ;;  %v692_v32 = vmax.f32 %v602_v16, 0.0  ;;  %v708_v33 = vmax.f32 %v666_v17, 0.0 }
 0x13e   : > { %v788_v28 = vmax.f32 %v767_v60, %v768_v20  ;;  %v792_v31 = vmax.f32 %v775_v61, %v776_v21 }
 0x13f   : > { %v693_v34 = vmax.f32 %v605_v24, 0.0  ;;  %v709_v35 = vmax.f32 %v669_v25, 0.0 }
 0x140   : > { %v796_v36 = vmax.f32 %v788_v28, %v1426_v29  ;;  %v800_v37 = vmax.f32 %v792_v31, %v1428_v30 }
 0x141   : > { %v718_v38 = vrot.slane %v693_v34, 7  ;;  %v753_v41 = vmax.f32 %v692_v32, %v693_v34  ;;  %v726_v42 = vrot.slane %v709_v35, 7  ;;  %v761_v43 = vmax.f32 %v708_v33, %v709_v35 }
 0x142   : > { %805 = vst.msk [vmem:[%s1408_s11 + $0x10] sm:$0xff] %vm783_vm3, %v796_v36  ;;  %809 = vst.msk [vmem:[%s1408_s11 + $0x30] sm:$0xff] %vm783_vm3, %v800_v37  ;;  %v609_v44 = vpop.f32.mrb[28].mxu0  ;;  %v673_v45 = vpop.f32.mrb[28].mxu1 }
 0x143   : > { %v737_v46 = vsel %vm730_vm4, -inf, %v718_v38  ;;  %v745_v47 = vsel %vm730_vm4, -inf, %v726_v42  ;;  %v610_v29 = vadd.f32 %v1372_v48, %v609_v44  ;;  %v674_v30 = vadd.f32 %v1372_v48, %v673_v45  ;;  %v611_v49 = vpop.f32.mrb[29].mxu0  ;;  %v675_v51 = vpop.f32.mrb[29].mxu1 }
 0x144   : > { %v769_v52 = vmax.f32 %v753_v41, %v737_v46  ;;  %v777_v53 = vmax.f32 %v761_v43, %v745_v47  ;;  %v612_v54 = vpop.f32.mrb[30].mxu0  ;;  %v676_v55 = vpop.f32.mrb[30].mxu1 }
 0x145   : > { %v613_v56 = vadd.f32 %v1372_v48, %v612_v54  ;;  %v677_v39 = vadd.f32 %v1372_v48, %v676_v55  ;;  %v614_v40 = vpop.f32.mrb[31].mxu0  ;;  %v678_v58 = vpop.f32.mrb[31].mxu1  ;;  %v694_v59 = vmax.f32 %v610_v29, 0.0  ;;  %v710_v60 = vmax.f32 %v674_v30, 0.0 }
 0x147   : > { %v695_v61 = vmax.f32 %v613_v56, 0.0  ;;  %v711_v62 = vmax.f32 %v677_v39, 0.0 }
 0x149   : > { %v719_v63 = vrot.slane %v695_v61, 7  ;;  %v754_v0 = vmax.f32 %v694_v59, %v695_v61  ;;  %v727_v1 = vrot.slane %v711_v62, 7  ;;  %v762_v2 = vmax.f32 %v710_v60, %v711_v62 }
 0x14b   : > { %v738_v3 = vsel %vm730_vm4, -inf, %v719_v63  ;;  %v746_v48 = vsel %vm730_vm4, -inf, %v727_v1 }
 0x14c   : > { %v770_v4 = vmax.f32 %v754_v0, %v738_v3  ;;  %v778_v5 = vmax.f32 %v762_v2, %v746_v48 }
 0x14e   : > { %v789_v6 = vmax.f32 %v769_v52, %v770_v4  ;;  %v798_v7 = vmax.f32 %v1406_v50, %v770_v4  ;;  %v793_v8 = vmax.f32 %v777_v53, %v778_v5  ;;  %811 = vst.msk [vmem:[#allocation2] sm:$0xff] %vm783_vm3, %v778_v5 }
 0x150   : > { %v797_v57 = vmax.f32 %v789_v6, %v768_v20  ;;  %807 = vst.msk [vmem:[%s1408_s11 + $0x20] sm:$0xff] %vm783_vm3, %v798_v7  ;;  %v801_v9 = vmax.f32 %v793_v8, %v776_v21 }
 0x152   : > { %806 = vst.msk [vmem:[%s1408_s11 + $0x18] sm:$0xff] %vm783_vm3, %v797_v57  ;;  %810 = vst.msk [vmem:[%s1408_s11 + $0x38] sm:$0xff] %vm783_vm3, %v801_v9 }
 0x153   : > { %1135 = shalt.err (!%p1132_p5)
}
 0x154   : > { %s1136_s4 = scalar_lea.hbm %s1481_s26, 1024  ;;  %s1140_s7 = scalar_lea.hbm %s1542_s3, 2048 }
 0x155   : > { %p1137_p6 = scmp.ne.s32.totalorder %s1481_s26, %s1136_s4  ;;  %p1141_p10 = scmp.lt.u32.totalorder %s1481_s26, %s1542_s3 }
 0x156   : > { %p1142_p11 = scmp.lt.u32.totalorder %s1140_s7, %s1136_s4  ;;  %p1144_p13 = scmp.lt.u32.totalorder %s1136_s4, %s1481_s26 }
 0x157   : > { %p1138_p7 = pnand %p1137_p6, %p1268_p4 }
 0x158   : > { %p1143_p12 = por %p1142_p11, %p1141_p10 }
 0x159   : > { %p1139_p9 = pneg %p1138_p7 }
 0x15a   : > { %p1145_p0 = por %p1144_p13, %p1143_p12 }
 0x15c   : > { %p1146_p1 = pnand %p1145_p0, %p1139_p9 }
 0x15e   : > { %1149 = shalt.err (!%p1146_p1)
}
 0x15f   : > { %s1206_s10 = smov 128   ;;  %s1207_s11 = smov 8  }
 0x160   : > { %1004 = dma.vmem_to_hbm [thread:$0]  (%p1268_p4), %s1483_s19, 1024, %s1481_s26, %s1493_s15, %s1206_s10, %s1206_s10, %s1207_s11  }
 0x161 PF: > { %p1010_p2 = scmp.ge.s32.totalorder %s1200_s17, 2  ;;  %s843_s18 = sand.u32 1, %s1180_s12  }
 0x162   : > { %s844_s21 = scalar_lea.sflag [#allocation4], %s843_s18 }
 0x163   : > { %p1007_p3 = pnand %p1010_p2, %p1275_p8 }
 0x165   : > { %1175 = dma.done.wait (!%p1007_p3), %s844_s21, 1024  }
 0x166   : > { %1177 = vsyncadd (!%p1007_p3), %s844_s21, 4294966272  ;;  %s16_s17 = sadd.s32 1, %s1200_s17   ;;  %s1545_s12 = smov %s1184_s13 }
 0x167   : > { %p13_p5 = scmp.ge.s32.totalorder %s16_s17, 4   ;;  %s1546_s13 = smov %s1188_s14 }
 0x168   : > { %s1547_s14 = smov %s1281_s25  ;;  %s1548_s15 = smov %s1196_s16 }
 0x169   : > { %s1549_s16 = smov %s1551_s20  ;;  %15 = sbr.rel (!%p13_p5) target bundleno = 4 (0x4), region = 71 }
 0x170   :  { %849 = vsyncpa [#allocation4], 1 }
 0x171   :  { %851 = vsyncpa [#allocation4 + $0x1], 1 }

</bundles_post_ra>
